<compile_context>
chip_gen: v7x
topology: tpu7x:2x2x1
jax: 0.10.0
libtpu: 0.0.40
codegen_flags: <defaults>
</compile_context>

<pallas_src>
import functools

import jax
import jax.numpy as jnp
from jax.experimental import pallas as pl
from jax.experimental.pallas import tpu as pltpu

# 48 MiB scoped VMEM limit is safe on every generation (v7x: 64 MiB physical
# per TensorCore; v5e/v6e: 128 MiB).  Pipeline buffers are sized against a
# 40 MiB budget, leaving ~8 MiB headroom for the resident accumulator block,
# semaphores and compiler-internal scratch.
_VMEM_LIMIT_BYTES = 48 * 1024 * 1024
_TILE_BUDGET_BYTES = 40 * 1024 * 1024
_LANE = 128


def _round_up(x, m):
    return ((x + m - 1) // m) * m


def _sublane_multiple(dtype):
    # VMEM tile rows: 8 for 32-bit, 16 for 16-bit, 32 for 8-bit dtypes.
    return max(8, 32 // jnp.dtype(dtype).itemsize)


def _choose_tile_pixels(C, HW, dtype):
    """Pick the pixel (lane) tile size TP from the *padded* VMEM footprint.

    Real VMEM cost per pixel of tile width:
      * logits  : 2 pipeline buffers x (C rounded up to the sublane multiple)
      * targets : 2 pipeline buffers x int32 padded to 8 sublanes
    The (1, 128) accumulator block is a constant few KiB and is ignored.
    """
    itemsize = jnp.dtype(dtype).itemsize
    c_pad = _round_up(C, _sublane_multiple(dtype))
    per_pixel = 2 * c_pad * itemsize + 2 * 8 * 4
    tp = _TILE_BUDGET_BYTES // per_pixel
    tp = max(_LANE, (tp // _LANE) * _LANE)
    tp = min(tp, _round_up(HW, _LANE))
    # TODO(synk): for vocabulary-sized C (c_pad * itemsize * 128 > budget) a
    # channel-split grid axis with an online-LSE accumulator would be needed
    # to stay inside v7x's 64 MiB VMEM; not implemented here.
    return tp


def _ce2d_kernel(x_ref, t_ref, out_ref, *, tiles_per_split, tile_pixels, hw):
    """Accumulate this tile's sum of -log_softmax(x)[target] into out_ref."""
    s = pl.program_id(0)   # pixel-split axis (v7x megacore)
    i = pl.program_id(2)   # pixel-tile axis within the split (reduction axis)

    @pl.when(i == 0)
    def _():
        out_ref[...] = jnp.zeros_like(out_ref)

    x = x_ref[...].astype(jnp.float32)      # (C, TP)  upcast in-kernel
    t = t_ref[...].astype(jnp.int32)        # (1, TP)  no-op if already int32

    # numerically-stable log-sum-exp over the channel (sublane) axis
    m = jnp.max(x, axis=0, keepdims=True)                        # (1, TP)
    xm = x - m                                                   # (C, TP)
    lse = jnp.log(jnp.sum(jnp.exp(xm), axis=0, keepdims=True))   # (1, TP)

    # gather xm[target]: (C, 1) class iota broadcast against (1, TP) targets
    cls = jax.lax.broadcasted_iota(jnp.int32, (x.shape[0], 1), 0)
    picked = jnp.sum(jnp.where(cls == t, xm, 0.0), axis=0, keepdims=True)

    # Mask lanes whose global pixel index is past the real H*W extent
    # (ragged last tile and clamped duplicate tiles of the split axis).
    # NOTE: keep the true select -- masked lanes may hold NaN/Inf garbage.
    g = s * tiles_per_split + i                                  # unclamped tile
    pix = g * tile_pixels + jax.lax.broadcasted_iota(
        jnp.int32, (1, tile_pixels), 1)
    loss = jnp.where(pix < hw, lse - picked, 0.0)                # (1, TP)

    # Fold the whole tile into the tiny resident accumulator.  The (1, 1)
    # tile sum broadcasts so every lane of the (1, 128) block carries the
    # same running total; the wrapper reads lane 0.
    out_ref[...] += jnp.sum(loss, axis=1, keepdims=True)


def cross_entropy_loss_2d(inputs, targets):
    """inputs: (N, C, H, W) float logits; targets: (N, H, W) integer classes.

    Returns mean over all N*H*W pixels of -log_softmax(inputs, axis=1)[target],
    matching nn.NLLLoss2d(weight=None, size_average=True)(F.log_softmax(x), t).
    """
    N, C, H, W = inputs.shape
    HW = H * W

    # Free reshapes only: no transpose, no pad, no dtype cast of either input.
    x = inputs.reshape(N, C, HW)
    t = targets.reshape(N, 1, HW)

    tp = _choose_tile_pixels(C, HW, inputs.dtype)
    n_tiles = pl.cdiv(HW, tp)              # real logits tiles along pixels
    n_splits = 2 if n_tiles >= 2 else 1    # v7x megacore: split pixels over TCs
    tps = pl.cdiv(n_tiles, n_splits)       # tiles per split
    last_tile = n_tiles - 1

    def x_map(s, n, i):
        return (n, 0, jnp.minimum(s * tps + i, last_tile))

    def t_map(s, n, i):
        return (n, 0, jnp.minimum(s * tps + i, last_tile))

    kernel = functools.partial(
        _ce2d_kernel, tiles_per_split=tps, tile_pixels=tp, hw=HW)

    partial = pl.pallas_call(
        kernel,
        out_shape=jax.ShapeDtypeStruct((n_splits, N, 1, _LANE), jnp.float32),
        grid_spec=pltpu.PrefetchScalarGridSpec(
            num_scalar_prefetch=0,
            grid=(n_splits, N, tps),
            in_specs=[
                # logits tile (C, TP) straight out of the native (N, C, HW)
                pl.BlockSpec((pl.Squeezed(), C, tp), x_map),
                # targets tile (1, TP)
                pl.BlockSpec((pl.Squeezed(), 1, tp), t_map),
            ],
            # per-(split, batch) lane-dense (1, 128) accumulator, resident
            # across the tile axis; written back to HBM once per (s, n).
            out_specs=pl.BlockSpec((pl.Squeezed(), pl.Squeezed(), 1, _LANE),
                                   lambda s, n, i: (s, n, 0, 0)),
        ),
        compiler_params=pltpu.CompilerParams(
            dimension_semantics=("parallel", "parallel", "arbitrary"),
            vmem_limit_bytes=_VMEM_LIMIT_BYTES,
        ),
    )(x, t)

    # Every lane of each slab holds the same total; take lane 0, tiny final sum.
    return jnp.sum(partial[..., 0]) / jnp.float32(N * HW)


if __name__ == "__main__":
    key = jax.random.PRNGKey(0)
    k_x, k_t = jax.random.split(key)

    N, C, H, W = 2, 4, 16, 16
    x = jax.random.normal(k_x, (N, C, H, W), dtype=jnp.float32)
    targets = jax.random.randint(k_t, (N, H, W), 0, C, dtype=jnp.int32)

    loss = cross_entropy_loss_2d(x, targets)
    loss = jax.block_until_ready(loss)

    # reference check in plain JAX (same semantics as the PyTorch module)
    logp_ref = jax.nn.log_softmax(x, axis=1)
    picked_ref = jnp.take_along_axis(logp_ref, targets[:, None, :, :], axis=1)
    ref = -jnp.mean(picked_ref)
    assert jnp.allclose(loss, ref, rtol=1e-5, atol=1e-5), (loss, ref)

    print("KERNEL_OK")
</pallas_src>

<mosaic_0001>
module attributes {stable_mosaic.version = 11 : i64} {
  func.func @_ce2d_kernel(%arg0: i32, %arg1: i32, %arg2: i32, %arg3: memref<1x4x256xf32, #tpu.memory_space<vmem>>, %arg4: memref<1x1x256xi32, #tpu.memory_space<vmem>>, %arg5: memref<1x1x1x128xf32, #tpu.memory_space<vmem>>) attributes {dimension_semantics = [#tpu.dimension_semantics<parallel>, #tpu.dimension_semantics<parallel>, #tpu.dimension_semantics<arbitrary>], iteration_bounds = array<i64: 1, 2, 1>, scalar_prefetch = 0 : i64, scratch_operands = 0 : i64, tpu.core_type = #tpu.core_type<tc>, window_params = [{transform_indices = @transform_0, window_bounds = array<i64: 1, 4, 256>}, {transform_indices = @transform_1, window_bounds = array<i64: 1, 1, 256>}, {transform_indices = @transform_2, window_bounds = array<i64: 1, 1, 1, 128>}]} {
    %c0_i32 = arith.constant 0 : i32
    %0 = arith.cmpi eq, %arg2, %c0_i32 : i32
    %1 = arith.extui %0 : i1 to i32
    %c0_i32_0 = arith.constant 0 : i32
    %2 = arith.cmpi ne, %1, %c0_i32_0 : i32
    scf.if %2 {
      %cst_20 = arith.constant 0.000000e+00 : f32
      %43 = vector.broadcast %cst_20 : f32 to vector<1x128xf32>
      %c0_21 = arith.constant 0 : index
      %c0_22 = arith.constant 0 : index
      %c0_23 = arith.constant 0 : index
      %c0_24 = arith.constant 0 : index
      %44 = vector.load %arg5[%c0_21, %c0_22, %c0_23, %c0_24] : memref<1x1x1x128xf32, #tpu.memory_space<vmem>>, vector<1x1x1x128xf32>
      %45 = vector.shape_cast %44 : vector<1x1x1x128xf32> to vector<1x128xf32>
      %46 = vector.shape_cast %43 : vector<1x128xf32> to vector<1x1x1x128xf32>
      tpu.vector_store %arg5[%c0_21, %c0_22, %c0_23, %c0_24], %46 {strides = array<i32>} : memref<1x1x1x128xf32, #tpu.memory_space<vmem>>, vector<1x1x1x128xf32>,
    } else {
    }
    %c0 = arith.constant 0 : index
    %c0_1 = arith.constant 0 : index
    %c0_2 = arith.constant 0 : index
    %3 = vector.load %arg3[%c0, %c0_1, %c0_2] : memref<1x4x256xf32, #tpu.memory_space<vmem>>, vector<1x4x256xf32>
    %4 = vector.shape_cast %3 : vector<1x4x256xf32> to vector<4x256xf32>
    %c0_3 = arith.constant 0 : index
    %c0_4 = arith.constant 0 : index
    %c0_5 = arith.constant 0 : index
    %5 = vector.load %arg4[%c0_3, %c0_4, %c0_5] : memref<1x1x256xi32, #tpu.memory_space<vmem>>, vector<1x1x256xi32>
    %6 = vector.shape_cast %5 : vector<1x1x256xi32> to vector<1x256xi32>
    %cst = arith.constant dense<0xFF800000> : vector<256xf32>
    %7 = vector.multi_reduction <maximumf>, %4, %cst [0] : vector<4x256xf32> to vector<256xf32>
    %8 = vector.shape_cast %7 : vector<256xf32> to vector<1x256xf32>
    %9 = vector.broadcast %8 : vector<1x256xf32> to vector<4x256xf32>
    %10 = arith.subf %4, %9 : vector<4x256xf32>
    %11 = math.exp %10 : vector<4x256xf32>
    %cst_6 = arith.constant dense<0.000000e+00> : vector<256xf32>
    %12 = vector.multi_reduction <add>, %11, %cst_6 [0] : vector<4x256xf32> to vector<256xf32>
    %13 = vector.shape_cast %12 : vector<256xf32> to vector<1x256xf32>
    %14 = math.log %13 : vector<1x256xf32>
    %15 = tpu.iota {dimensions = array<i32: 0>} : vector<4x1xi32>
    %16 = vector.broadcast %15 : vector<4x1xi32> to vector<4x256xi32>
    %17 = vector.broadcast %6 : vector<1x256xi32> to vector<4x256xi32>
    %18 = arith.cmpi eq, %16, %17 : vector<4x256xi32>
    %cst_7 = arith.constant 0.000000e+00 : f32
    %19 = vector.broadcast %cst_7 : f32 to vector<4x256xf32>
    %20 = arith.select %18, %10, %19 : vector<4x256xi1>, vector<4x256xf32>
    %cst_8 = arith.constant dense<0.000000e+00> : vector<256xf32>
    %21 = vector.multi_reduction <add>, %20, %cst_8 [0] : vector<4x256xf32> to vector<256xf32>
    %22 = vector.shape_cast %21 : vector<256xf32> to vector<1x256xf32>
    %c1_i32 = arith.constant 1 : i32
    %23 = arith.muli %arg0, %c1_i32 : i32
    %24 = arith.addi %23, %arg2 : i32
    %c256_i32 = arith.constant 256 : i32
    %25 = arith.muli %24, %c256_i32 : i32
    %26 = tpu.iota {dimensions = array<i32: 1>} : vector<1x256xi32>
    %27 = vector.broadcast %25 : i32 to vector<1x256xi32>
    %28 = arith.addi %27, %26 : vector<1x256xi32>
    %c256_i32_9 = arith.constant 256 : i32
    %29 = vector.broadcast %c256_i32_9 : i32 to vector<1x256xi32>
    %30 = arith.cmpi slt, %28, %29 : vector<1x256xi32>
    %31 = arith.subf %14, %22 : vector<1x256xf32>
    %cst_10 = arith.constant 0.000000e+00 : f32
    %32 = vector.broadcast %cst_10 : f32 to vector<1x256xf32>
    %33 = arith.select %30, %31, %32 : vector<1x256xi1>, vector<1x256xf32>
    %c0_11 = arith.constant 0 : index
    %c0_12 = arith.constant 0 : index
    %c0_13 = arith.constant 0 : index
    %c0_14 = arith.constant 0 : index
    %34 = vector.load %arg5[%c0_11, %c0_12, %c0_13, %c0_14] : memref<1x1x1x128xf32, #tpu.memory_space<vmem>>, vector<1x1x1x128xf32>
    %35 = vector.shape_cast %34 : vector<1x1x1x128xf32> to vector<1x128xf32>
    %cst_15 = arith.constant dense<0.000000e+00> : vector<1xf32>
    %36 = vector.multi_reduction <add>, %33, %cst_15 [1] : vector<1x256xf32> to vector<1xf32>
    %37 = vector.shape_cast %36 : vector<1xf32> to vector<1x1xf32>
    %38 = vector.broadcast %37 : vector<1x1xf32> to vector<1x128xf32>
    %39 = arith.addf %35, %38 : vector<1x128xf32>
    %c0_16 = arith.constant 0 : index
    %c0_17 = arith.constant 0 : index
    %c0_18 = arith.constant 0 : index
    %c0_19 = arith.constant 0 : index
    %40 = vector.load %arg5[%c0_16, %c0_17, %c0_18, %c0_19] : memref<1x1x1x128xf32, #tpu.memory_space<vmem>>, vector<1x1x1x128xf32>
    %41 = vector.shape_cast %40 : vector<1x1x1x128xf32> to vector<1x128xf32>
    %42 = vector.shape_cast %39 : vector<1x128xf32> to vector<1x1x1x128xf32>
    tpu.vector_store %arg5[%c0_16, %c0_17, %c0_18, %c0_19], %42 {strides = array<i32>} : memref<1x1x1x128xf32, #tpu.memory_space<vmem>>, vector<1x1x1x128xf32>,
    return
  }
  func.func @transform_0(%arg0: i32, %arg1: i32, %arg2: i32) -> (i32, i32, i32) {
    %c1_i32 = arith.constant 1 : i32
    %0 = arith.muli %arg0, %c1_i32 : i32
    %1 = arith.addi %0, %arg2 : i32
    %c0_i32 = arith.constant 0 : i32
    %2 = arith.minsi %1, %c0_i32 : i32
    %c0_i32_0 = arith.constant 0 : i32
    %c0_i32_1 = arith.constant 0 : i32
    return %arg1, %c0_i32_0, %2 : i32, i32, i32
  }
  func.func @transform_1(%arg0: i32, %arg1: i32, %arg2: i32) -> (i32, i32, i32) {
    %c1_i32 = arith.constant 1 : i32
    %0 = arith.muli %arg0, %c1_i32 : i32
    %1 = arith.addi %0, %arg2 : i32
    %c0_i32 = arith.constant 0 : i32
    %2 = arith.minsi %1, %c0_i32 : i32
    %c0_i32_0 = arith.constant 0 : i32
    %c0_i32_1 = arith.constant 0 : i32
    return %arg1, %c0_i32_0, %2 : i32, i32, i32
  }
  func.func @transform_2(%arg0: i32, %arg1: i32, %arg2: i32) -> (i32, i32, i32, i32) {
    %c0_i32 = arith.constant 0 : i32
    %c0_i32_0 = arith.constant 0 : i32
    %c0_i32_1 = arith.constant 0 : i32
    return %arg0, %arg1, %c0_i32, %c0_i32_0 : i32, i32, i32, i32
  }
}

</mosaic_0001>

<bundles_post_ra>
// kernel: tpu_custom_call.1
= control target key start
LH: loop header
LB: loop body
LE: loop exit
PB: predicated region body
PF: predicated region fallthrough
CT: control target
= control target key end

     0   :  { %7 = vsyncpa [#allocation3], 0  ;;  %s967_s0 = inlined_call_operand.hbm [shape: f32[2,4,256], index: 0, kind: input, shape index: {}]   ;;  %s968_s1 = inlined_call_operand.hbm [shape: s32[2,1,256], index: 1, kind: input, shape index: {}]   ;;  %s969_s2 = inlined_call_operand.hbm [shape: f32[1,2,1,128], index: 2, kind: output, shape index: {}]  }
   0x1   :  { %9 = vsyncpa [#allocation3 + $0x1], 0 }
   0x2   :  { %10 = vsyncpa [#allocation6], 0 }
   0x3   :  { %12 = vsyncpa [#allocation6 + $0x1], 0 }
   0x4   :  { %13 = vsyncpa [#allocation4], 0 }
   0x5   :  { %15 = vsyncpa [#allocation4 + $0x1], 0  ;;  %s739_s9 = smov 0   ;;  %s741_s10 = smov 0  }
   0x6   :  { %s743_s11 = smov 0   ;;  %s745_s12 = smov 0  }
   0x7   :  { %s747_s13 = smov 0   ;;  %s749_s14 = smov 0  }
   0x8 LB: > { %s479_s15 = sadd.s32 4294967295, %s718_s14   ;;  %s480_s16 = sadd.s32 4294967294, %s718_s14   ;;  %s718_s14 = sphi %s749_s14, %s21_s14   ;;  %s714_s13 = sphi %s747_s13, %s989_s13   ;;  %s710_s12 = sphi %s745_s12, %s988_s12   ;;  %s706_s11 = sphi %s743_s11, %s987_s11   ;;  %s702_s10 = sphi %s741_s10, %s986_s10   ;;  %s698_s9 = sphi %s739_s9, %s985_s9  }
   0x9   : > { %s36_s17 = sadd.s32 1, %s714_s13  ;;  %s55_s18 = sadd.s32 1, %s706_s11 }
   0xa   : > { %p38_p0 = scmp.ge.s32.totalorder %s36_s17, 2  ;;  %p62_p1 = scmp.ne.s32.totalorder %s706_s11, %s702_s10 }
   0xb   : > { %p63_p2 = scmp.eq.s32.totalorder %s718_s14, 0  ;;  %p68_p3 = scmp.ne.s32.totalorder %s702_s10, %s698_s9 }
   0xc   : > { %s991_s17 = smov (%p38_p0, %s36_s17), 0  ;;  %p69_p5 = scmp.eq.s32.totalorder %s479_s15, 0 }
   0xd   : > { %p780_p4 = por %p63_p2, %p62_p1  ;;  %s50_s20 = ssub.s32 %s714_s13, %s991_s17 }
   0xe   : > { %p128_p6 = scmp.eq.s32.totalorder %s479_s15, 1  ;;  %p53_p7 = scmp.eq.s32.totalorder %s50_s20, 0 }
   0xf   : > { %p786_p8 = por %p69_p5, %p68_p3  ;;  %p134_p10 = scmp.eq.s32.totalorder %s480_s16, 1 }
  0x10   : > { %p790_p9 = por %p128_p6, %p62_p1  ;;  %p514_p13 = scmp.lt.s32.totalorder %s718_s14, 2 }
  0x11   : > { %s973_s21 = scalar_select %p786_p8, 1, 0 }
  0x12   : > { %s974_s22 = scalar_select %p790_p9, 1, 0 }
  0x13   : > { %s795_s23 = scalar_select %p53_p7, %s706_s11, %s55_s18  }
  0x14   : > { %p797_p11 = por %p134_p10, %p68_p3  ;;  %s804_s25 = sand.u32 1, %s706_s11  }
  0x15   : > { %s483_s26 = sshll.u32 %s804_s25, 3  ;;  %s495_s27 = sshll.u32 %s714_s13, 7 }
  0x16   : > { %s975_s24 = scalar_select %p797_p11, 1, 0 }
  0x17   : > { %s811_s30 = scalar_lea.hbm %s967_s0, %s495_s27  ;;  %s158_s3 = scalar_lea.vmem [#allocation2], %s483_s26 }
  0x18   : > { %s171_s4 = sshll.u32 %s158_s3, 4  ;;  %p817_p0 = pnand %p514_p13, %p780_p4  ;;  %s813_s4 = int_to_ptr.vmem [resolvable:$true] %s171_s4 }
  0x19   : > { %s155_s6 = scalar_lea.sflag [#allocation3], %s804_s25  ;;  %s572_s7 = scalar_lea.hbm %s811_s30, 128 }
  0x1a   : > { %p573_p3 = scmp.ne.s32.totalorder %s811_s30, %s572_s7  ;;  %p574_p5 = pneg %p817_p0 }
  0x1b   : > { %s577_s16 = scalar_lea.hbm %s967_s0, 256  ;;  %p578_p4 = scmp.lt.u32.totalorder %s811_s30, %s967_s0 }
  0x1c   : > { %p575_p6 = pnand %p574_p5, %p573_p3  ;;  %p579_p10 = scmp.lt.u32.totalorder %s577_s16, %s572_s7 }
  0x1d   : > { %p581_p12 = scmp.lt.u32.totalorder %s572_s7, %s811_s30 }
  0x1e   : > { %p576_p7 = pneg %p575_p6  ;;  %p580_p13 = por %p579_p10, %p578_p4 }
  0x20   : > { %p582_p1 = por %p581_p12, %p580_p13 }
  0x22   : > { %p583_p2 = pnand %p582_p1, %p576_p7 }
  0x24   : > { %586 = shalt.err (!%p583_p2)
}
  0x25   : > { %s587_s20 = scalar_lea.vmem %s813_s4, 128  ;;  %s720_s26 = smov [#allocation2]  }
  0x26   : > { %p588_p3 = scmp.ne.s32.totalorder %s813_s4, %s587_s20  ;;  %s592_s27 = sshll.u32 %s720_s26, 4  ;;  %s593_s27 = int_to_ptr.vmem [resolvable:$false] %s592_s27 }
  0x27   : > { %s594_s28 = scalar_lea.vmem %s593_s27, 256  ;;  %p595_p9 = scmp.lt.s32.totalorder %s813_s4, %s593_s27 }
  0x28   : > { %p590_p6 = pnand %p588_p3, %p574_p5  ;;  %p596_p4 = scmp.lt.s32.totalorder %s594_s28, %s587_s20 }
  0x2a   : > { %p591_p11 = pneg %p590_p6  ;;  %p597_p10 = por %p596_p4, %p595_p9 }
  0x2c   : > { %p598_p12 = pnand %p597_p10, %p591_p11 }
  0x2e   : > { %601 = shalt.err (!%p598_p12)
}
  0x2f   : > { %506 = dma.hbm_to_vmem [thread:$0]  (!%p817_p0), %s811_s30, 128, %s813_s4, %s155_s6  }
  0x30   : > { %p977_p1 = scmp.lt.s32.totalorder %s718_s14, 3  ;;  %p978_p2 = scmp.ge.s32.totalorder %s718_s14, 1 }
  0x31   : > { %s486_s3 = sshll.u32 %s804_s25, 1  ;;  %s496_s7 = sshll.u32 %s714_s13, 5 }
  0x32   : > { %p853_p7 = pnand %p978_p2, %p977_p1  ;;  %s862_s16 = scalar_lea.hbm %s968_s1, %s496_s7 }
  0x33   : > { %s182_s18 = scalar_lea.vmem [#allocation5], %s486_s3  ;;  %s179_s30 = scalar_lea.sflag [#allocation6], %s804_s25 }
  0x34   : > { %s979_s29 = scalar_select %p853_p7, 1, 0 }
  0x35   : > { %s195_s19 = sshll.u32 %s182_s18, 4  ;;  %s602_s4 = scalar_lea.hbm %s862_s16, 32  ;;  %s196_s19 = int_to_ptr.vmem [resolvable:$true] %s195_s19 }
  0x36   : > { %p603_p9 = scmp.ne.s32.totalorder %s862_s16, %s602_s4  ;;  %s607_s26 = scalar_lea.hbm %s968_s1, 64 }
  0x37   : > { %p608_p3 = scmp.lt.u32.totalorder %s862_s16, %s968_s1  ;;  %p609_p6 = scmp.lt.u32.totalorder %s607_s26, %s602_s4 }
  0x38   : > { %p605_p11 = pnand %p603_p9, %p574_p5  ;;  %p611_p10 = scmp.lt.u32.totalorder %s602_s4, %s862_s16 }
  0x39   : > { %p610_p4 = por %p609_p6, %p608_p3 }
  0x3a   : > { %p606_p13 = pneg %p605_p11 }
  0x3b   : > { %p612_p12 = por %p611_p10, %p610_p4 }
  0x3d   : > { %p613_p1 = pnand %p612_p12, %p606_p13 }
  0x3f   : > { %616 = shalt.err (!%p613_p1)
}
  0x40   : > { %s617_s25 = scalar_lea.vmem %s196_s19, 32  ;;  %s721_s3 = smov [#allocation5]  }
  0x41   : > { %p618_p2 = scmp.ne.s32.totalorder %s196_s19, %s617_s25  ;;  %s622_s7 = sshll.u32 %s721_s3, 4  ;;  %s623_s7 = int_to_ptr.vmem [resolvable:$false] %s622_s7 }
  0x42   : > { %s624_s8 = scalar_lea.vmem %s623_s7, 64  ;;  %p625_p8 = scmp.lt.s32.totalorder %s196_s19, %s623_s7 }
  0x43   : > { %p620_p9 = pnand %p618_p2, %p574_p5  ;;  %p626_p7 = scmp.lt.s32.totalorder %s624_s8, %s617_s25 }
  0x45   : > { %p621_p11 = pneg %p620_p9  ;;  %p627_p3 = por %p626_p7, %p625_p8 }
  0x47   : > { %p628_p6 = pnand %p627_p3, %p621_p11 }
  0x49   : > { %631 = shalt.err (!%p628_p6)
}
  0x4a   : > { %509 = dma.hbm_to_vmem [thread:$0]  (!%p817_p0), %s862_s16, 32, %s196_s19, %s179_s30  }
  0x4b   : > { %p980_p13 = scmp.ne.s32.totalorder %s979_s29, 0 }
  0x4c   : > { %s887_s15 = sand.u32 (!%p980_p13), 1, %s702_s10   ;;  %p981_p5 = scmp.ne.s32.totalorder (!%p980_p13), %s973_s21, 0 }
  0x4d   : > { %204 = sbr.rel (%p980_p13) target bundleno = 311 (0x137), region = 28  ;;  %s490_s18 = sshll.u32 (!%p980_p13), %s887_s15, 3 }
  0x4e   : > { %s207_s4 = scalar_lea.sflag (!%p980_p13), [#allocation3], %s887_s15  ;;  %s210_s6 = scalar_lea.vmem (!%p980_p13), [#allocation2], %s490_s18 }
  0x54   : > { %685 = dma.done.wait (%p981_p5), %s207_s4, 128  }
  0x55   : > { %687 = vsyncadd (%p981_p5), %s207_s4, 4294967168  ;;  %s491_s5 = sshll.u32 %s887_s15, 1  ;;  %s216_s29 = scalar_lea.sflag [#allocation6], %s887_s15 }
  0x56   : > { %s219_s16 = scalar_lea.vmem [#allocation5], %s491_s5 }
  0x57   : > { %689 = dma.done.wait (%p981_p5), %s216_s29, 32  }
  0x58   : > { %691 = vsyncadd (%p981_p5), %s216_s29, 4294967264  ;;  %s902_s19 = scalar_lea.vmem [#allocation7], %s887_s15  ;;  %v722_v0 = vmov 0.0   ;;  %vm262_vm0 = vcmask 1043456   ;;  %v257_v1 = vld [vmem:[%s210_s6] sm:$0xff]  ;;  %v305_v14 = vlaneseq  ;;  %s492_s21 = sshll.u32 %s710_s12, 4 }
  0x59   : > { %256 = vst [vmem:[%s902_s19] sm:$0x1] %v722_v0  ;;  %v260_v2 = vcombine.high %v257_v1, %v257_v1  ;;  %v263_v3 = vsel %vm262_vm0, %v257_v1, -inf  ;;  %v258_v22 = vld [vmem:[%s219_s16] sm:$0x3]  ;;  %s371_s30 = sshll.u32 %s902_s19, 4  ;;  %s917_s27 = scalar_lea.hbm %s969_s2, %s492_s21  ;;  %s919_s30 = int_to_ptr.vmem [resolvable:$true] %s371_s30 }
  0x5a   : > { %v264_v4 = vrot.slane %v263_v3, 4  ;;  %v306_v18 = vshrl.u32 %v305_v14, 7  ;;  %s357_s28 = scalar_lea.sflag [#allocation4], %s887_s15  ;;  %s632_s25 = scalar_lea.vmem %s919_s30, 16 }
  0x5b   : > { %v270_v5 = vsel %vm262_vm0, %v260_v2, -inf  ;;  %p633_p8 = scmp.ne.s32.totalorder %s919_s30, %s632_s25  ;;  %p982_p0 = scmp.ne.s32.totalorder %s974_s22, 0 }
  0x5c   : > { %v265_v6 = vmax.f32 %v263_v3, %v264_v4  ;;  %v271_v7 = vrot.slane %v270_v5, 4  ;;  %v309_v21 = vsub.s32 0, %v306_v18  ;;  %v313_v24 = vsub.s32 1, %v306_v18  ;;  %s723_s12 = smov [#allocation7]  }
  0x5d   : > { %p634_p7 = pnand %p633_p8, %p982_p0  ;;  %s636_s3 = sshll.u32 %s723_s12, 4  ;;  %s637_s3 = int_to_ptr.vmem [resolvable:$false] %s636_s3 }
  0x5e   : > { %v266_v8 = vrot.slane %v265_v6, 2  ;;  %v272_v9 = vmax.f32 %v270_v5, %v271_v7  ;;  %v310_v25 = vrot.slane %v258_v22, %v309_v21  ;;  %v314_v26 = vrot.slane %v258_v22, %v313_v24  ;;  %s638_s7 = scalar_lea.vmem %s637_s3, 32  ;;  %p639_p10 = scmp.lt.s32.totalorder %s919_s30, %s637_s3 }
  0x5f   : > { %p635_p4 = pneg %p634_p7  ;;  %p640_p12 = scmp.lt.s32.totalorder %s638_s7, %s632_s25 }
  0x60   : > { %v267_v10 = vmax.f32 %v265_v6, %v266_v8  ;;  %v273_v11 = vrot.slane %v272_v9, 2  ;;  %vm315_vm1 = vcmp.eq.s32.totalorder %v306_v18, %v310_v25  ;;  %vm316_vm2 = vcmp.eq.s32.totalorder %v306_v18, %v314_v26  ;;  %v350_v3 = vld [vmem:[%s902_s19] sm:$0x1] }
  0x61   : > { %p641_p1 = por %p640_p12, %p639_p10 }
  0x62   : > { %v268_v12 = vrot.slane %v267_v10, 1  ;;  %v274_v13 = vmax.f32 %v272_v9, %v273_v11 }
  0x63   : > { %p642_p2 = pnand %p641_p1, %p635_p4 }
  0x64   : > { %v269_v15 = vmax.f32 %v267_v10, %v268_v12  ;;  %v275_v16 = vrot.slane %v274_v13, 1 }
  0x66   : > { %v276_v17 = vmax.f32 %v274_v13, %v275_v16 }
  0x68   : > { %v279_v19 = vcombine.low %v269_v15, %v276_v17 }
  0x6a   : > { %v281_v20 = vsub.f32 %v257_v1, %v279_v19 }
  0x6c   : > { %v282_v23 = vmul.f32 1.442695, %v281_v20  ;;  %v318_v27 = vcombine.high %v281_v20, %v281_v20  ;;  %v320_v28 = vsel %vm315_vm1, %v281_v20, 0.0 }
  0x6d   : > { %v322_v31 = vsel %vm262_vm0, %v320_v28, 0.0 }
  0x6e   : > { %566 = vpow2.f32 %v282_v23  ;;  %v321_v29 = vsel %vm316_vm2, %v318_v27, 0.0  ;;  %v323_v37 = vrot.slane %v322_v31, 4 }
  0x6f   : > { %v329_v35 = vsel %vm262_vm0, %v321_v29, 0.0 }
  0x70   : > { %v330_v40 = vrot.slane %v329_v35, 4  ;;  %v324_v43 = vadd.f32 %v323_v37, %v322_v31 }
  0x72   : > { %v331_v46 = vadd.f32 %v330_v40, %v329_v35  ;;  %v325_v49 = vrot.slane %v324_v43, 2 }
  0x74   : > { %v332_v52 = vrot.slane %v331_v46, 2  ;;  %v326_v54 = vadd.f32 %v325_v49, %v324_v43 }
  0x76   : > { %v333_v55 = vadd.f32 %v332_v52, %v331_v46  ;;  %v327_v56 = vrot.slane %v326_v54, 1 }
  0x78   : > { %v567_v30 = vpop.eup %566  ;;  %v334_v57 = vrot.slane %v333_v55, 1  ;;  %v328_v58 = vadd.f32 %v327_v56, %v326_v54 }
  0x79   : > { %v285_v32 = vcombine.high %v567_v30, %v567_v30  ;;  %v287_v33 = vsel %vm262_vm0, %v567_v30, 0.0 }
  0x7a   : > { %v288_v34 = vrot.slane %v287_v33, 4  ;;  %v335_v61 = vadd.f32 %v334_v57, %v333_v55 }
  0x7b   : > { %v294_v36 = vsel %vm262_vm0, %v285_v32, 0.0 }
  0x7c   : > { %v289_v38 = vadd.f32 %v288_v34, %v287_v33  ;;  %v295_v39 = vrot.slane %v294_v36, 4 }
  0x7e   : > { %v290_v41 = vrot.slane %v289_v38, 2  ;;  %v296_v42 = vadd.f32 %v295_v39, %v294_v36 }
  0x80   : > { %v291_v44 = vadd.f32 %v290_v41, %v289_v38  ;;  %v297_v45 = vrot.slane %v296_v42, 2 }
  0x82   : > { %v292_v47 = vrot.slane %v291_v44, 1  ;;  %v298_v48 = vadd.f32 %v297_v45, %v296_v42 }
  0x84   : > { %v293_v50 = vadd.f32 %v292_v47, %v291_v44  ;;  %v299_v51 = vrot.slane %v298_v48, 1 }
  0x86   : > { %v300_v53 = vadd.f32 %v299_v51, %v298_v48  ;;  %568 = vlog2.f32 %v293_v50 }
  0x88   : > { %570 = vlog2.f32 %v300_v53 }
  0x90   : > { %v569_v59 = vpop.eup %568 }
  0x91   : > { %v302_v60 = vmul.f32 0.6931472, %v569_v59 }
  0x92   : > { %v571_v62 = vpop.eup %570 }
  0x93   : > { %v304_v63 = vmul.f32 0.6931472, %v571_v62  ;;  %v346_v0 = vsub.f32 %v302_v60, %v328_v58 }
  0x95   : > { %v347_v1 = vsub.f32 %v304_v63, %v335_v61 }
  0x97   : > { %v351_v2 = vadd.f32 %v347_v1, %v346_v0 }
  0x99   : > { %352 = vadd.xlane.f32.xlu0 %v351_v2 }
 0x126   : > { %v353_v4 = vpop.xlane.xlu0 %352 }
 0x127   : > { %v354_v5 = vadd.f32 %v353_v4, %v350_v3 }
 0x129   : > { %355 = vst [vmem:[%s902_s19] sm:$0x1] %v354_v5 }
 0x12a   : > { %645 = shalt.err (!%p642_p2)
}
 0x12b   : > { %s646_s8 = scalar_lea.hbm %s917_s27, 16  ;;  %s650_s4 = scalar_lea.hbm %s969_s2, 32 }
 0x12c   : > { %p647_p9 = scmp.ne.s32.totalorder %s917_s27, %s646_s8  ;;  %p651_p6 = scmp.lt.u32.totalorder %s917_s27, %s969_s2 }
 0x12d   : > { %p652_p13 = scmp.lt.u32.totalorder %s650_s4, %s646_s8  ;;  %p654_p8 = scmp.lt.u32.totalorder %s646_s8, %s917_s27 }
 0x12e   : > { %p648_p11 = pnand %p647_p9, %p982_p0 }
 0x12f   : > { %p653_p5 = por %p652_p13, %p651_p6 }
 0x130   : > { %p649_p3 = pneg %p648_p11 }
 0x131   : > { %p655_p7 = por %p654_p8, %p653_p5 }
 0x133   : > { %p656_p4 = pnand %p655_p7, %p649_p3 }
 0x135   : > { %659 = shalt.err (!%p656_p4)
}
 0x136   : > { %501 = dma.vmem_to_hbm [thread:$0]  (%p982_p0), %s919_s30, 16, %s917_s27, %s357_s28  }
 0x137 PF: > { %s383_s29 = sand.u32 1, %s698_s9   ;;  %p983_p10 = scmp.ne.s32.totalorder %s975_s24, 0 }
 0x138   : > { %p984_p12 = scmp.ge.s32.totalorder %s718_s14, 2  ;;  %s384_s16 = scalar_lea.sflag [#allocation4], %s383_s29 }
 0x13a   : > { %p511_p1 = pnand %p984_p12, %p983_p10 }
 0x13c   : > { %693 = dma.done.wait (!%p511_p1), %s384_s16, 16  }
 0x13d   : > { %695 = vsyncadd (!%p511_p1), %s384_s16, 4294967280  ;;  %s21_s14 = sadd.s32 1, %s718_s14   ;;  %s985_s9 = smov %s702_s10 }
 0x13e   : > { %p18_p2 = scmp.ge.s32.totalorder %s21_s14, 4   ;;  %s986_s10 = smov %s706_s11 }
 0x13f   : > { %s987_s11 = smov %s795_s23  ;;  %s988_s12 = smov %s714_s13 }
 0x140   : > { %s989_s13 = smov %s991_s17  ;;  %20 = sbr.rel (!%p18_p2) target bundleno = 8 (0x8), region = 90 }
 0x147   :  { %388 = vsyncpa [#allocation3], 1 }
 0x148   :  { %390 = vsyncpa [#allocation3 + $0x1], 1 }
 0x149   :  { %391 = vsyncpa [#allocation6], 1 }
 0x14a   :  { %393 = vsyncpa [#allocation6 + $0x1], 1 }
 0x14b   :  { %394 = vsyncpa [#allocation4], 1 }
 0x14c   :  { %396 = vsyncpa [#allocation4 + $0x1], 1 }

</bundles_post_ra>
